<compile_context>
chip_gen: v5e
topology: v5e:2x2
jax: 0.10.0
libtpu: 0.0.40
codegen_flags: <defaults>
</compile_context>

<pallas_src>
import jax
import jax.numpy as jnp
from jax.experimental import pallas as pl
from jax.experimental.pallas import tpu as pltpu

_LANES = 128
_SUBLANES = 8
_TARGET_BLOCK_ROWS = 4096   # (4096, 128) f32 block = 2 MiB per operand
_SMALL_N = _TARGET_BLOCK_ROWS * _LANES   # below this a pad copy is negligible


def _round_up(x, m):
    return ((x + m - 1) // m) * m


def _plain_jax_loss(inp, target, mask):
    """Reference semantics in plain JAX (used only for the f64 corner case)."""
    if mask is None:
        return jnp.mean((inp - target) ** 2)
    m = mask
    while m.ndim < inp.ndim:
        m = m[..., None]
    return jnp.mean((inp * m - target * m) ** 2)


def _make_sum_sq_kernel(block_rows, valid_rows, ragged, masked):
    """Sum of squared (optionally masked) differences into an (8,128) block.

    The single grid axis is a reduction ("arbitrary"); the output BlockSpec
    maps every step to block (0, 0), so o_ref stays VMEM-resident across the
    whole reduction and we accumulate directly into it.
    """

    def kernel(*refs):
        if masked:
            x_ref, y_ref, m_ref, o_ref = refs
        else:
            x_ref, y_ref, o_ref = refs
        j = pl.program_id(0)

        @pl.when(j == 0)
        def _():
            o_ref[...] = jnp.zeros_like(o_ref)

        # Stream native dtype; cast to f32 on the VPU (hidden under DMA).
        d = x_ref[...].astype(jnp.float32) - y_ref[...].astype(jnp.float32)
        if masked:
            # m_ref is (block_rows, 1) for the compact per-row mask (lane
            # broadcast) or (block_rows, 128) for the fallback full mask.
            d = d * m_ref[...]
        dd = d * d

        if ragged:
            # Last block extends past the array; Pallas leaves those rows
            # undefined, so select (not multiply — garbage may be NaN/Inf)
            # them to zero before accumulating.
            rid = (jax.lax.broadcasted_iota(jnp.int32, (block_rows, 1), 0)
                   + j * block_rows)
            dd = jnp.where(rid < valid_rows, dd, 0.0)

        # Fold rows into the (8,128) accumulator: pure VPU vreg adds, no
        # per-step cross-lane reduction.  The reshape splits the sublane axis
        # at an 8-row boundary, so it is (8,128)-tile aligned (no VMEM copy).
        o_ref[...] += jnp.sum(dd.reshape(-1, _SUBLANES, _LANES), axis=0)

    return kernel


def masked_mse_loss(inp, target, mask=None):
    """JAX/Pallas equivalent of MaskedMSELoss.forward."""
    n = int(inp.size)
    out_dtype = jnp.result_type(inp, target)

    if n == 0:
        # Mean over an empty tensor -> NaN (matches nn.MSELoss).
        return jnp.array(jnp.nan, dtype=out_dtype)
    if out_dtype == jnp.dtype("float64"):
        # f64 has no sensible TPU kernel path; keep full precision in XLA.
        return _plain_jax_loss(inp, target, mask)

    # ---- Row layout -------------------------------------------------------
    small = n <= _SMALL_N
    # Small inputs: round up to a whole (8,128) tile multiple (cheap copy) and
    # run a single block.  Large inputs: at most a <128-element lane pad (only
    # when n % 128 != 0, which is rare); the ragged last block is masked
    # in-kernel instead of padding the operands.
    pad_mult = _SUBLANES * _LANES if small else _LANES
    padded_n = _round_up(n, pad_mult)
    pad = padded_n - n
    rows = padded_n // _LANES
    block_rows = rows if small else _TARGET_BLOCK_ROWS
    n_blocks = -(-rows // block_rows)
    ragged = (rows % block_rows) != 0   # only possible on the large path

    def _prep(a):
        a = a.reshape(-1)
        if pad:
            # Zero pad -> padded elements contribute exactly 0 to the sum.
            a = jnp.pad(a, (0, pad))
        return a.reshape(rows, _LANES)

    x2 = _prep(inp)
    y2 = _prep(target)

    # ---- Mask preparation (compact per-row mask when lane-aligned) ---------
    mask_rows = None    # (rows, 1) f32, one value per 128-lane row
    mask_full = None    # (rows, 128) f32 fallback
    if mask is not None:
        mask = jnp.asarray(mask)
        group_ok = (
            mask.ndim <= inp.ndim
            and tuple(mask.shape) == tuple(inp.shape[: mask.ndim])
            and mask.size > 0
            and (n // int(mask.size)) % _LANES == 0
        )
        if group_ok:
            group_rows = (n // int(mask.size)) // _LANES
            mr = jnp.repeat(mask.reshape(-1).astype(jnp.float32), group_rows)
            if mr.shape[0] != rows:       # tiny small-input tail
                mr = jnp.pad(mr, (0, rows - mr.shape[0]))
            mask_rows = mr.reshape(rows, 1)
        else:
            # Rare fallback: groups not 128-aligned -> stream the broadcast
            # mask (single fused materialization pass).
            m = mask
            while m.ndim < inp.ndim:
                m = m[..., None]
            mf = jnp.broadcast_to(m, inp.shape).astype(jnp.float32).reshape(-1)
            if pad:
                mf = jnp.pad(mf, (0, pad))
            mask_full = mf.reshape(rows, _LANES)

    # ---- pallas_call ---------------------------------------------------------
    data_spec = pl.BlockSpec((block_rows, _LANES), lambda j: (j, 0))
    operands = [x2, y2]
    in_specs = [data_spec, data_spec]
    masked = mask is not None
    mask_bytes = 0
    if masked:
        if mask_rows is not None:
            operands.append(mask_rows)
            in_specs.append(pl.BlockSpec((block_rows, 1), lambda j: (j, 0)))
            mask_bytes = int(mask_rows.size) * 4
        else:
            operands.append(mask_full)
            in_specs.append(data_spec)
            mask_bytes = int(mask_full.size) * 4

    bytes_accessed = (rows * _LANES * (x2.dtype.itemsize + y2.dtype.itemsize)
                      + mask_bytes + _SUBLANES * _LANES * 4)
    flops = (4 if masked else 3) * rows * _LANES   # sub, (mask mul), square, add

    partials = pl.pallas_call(
        _make_sum_sq_kernel(block_rows, rows, ragged, masked),
        out_shape=jax.ShapeDtypeStruct((_SUBLANES, _LANES), jnp.float32),
        grid_spec=pltpu.PrefetchScalarGridSpec(
            num_scalar_prefetch=0,
            grid=(n_blocks,),
            in_specs=in_specs,
            out_specs=pl.BlockSpec((_SUBLANES, _LANES), lambda j: (0, 0)),
        ),
        compiler_params=pltpu.CompilerParams(
            dimension_semantics=("arbitrary",),
            vmem_limit_bytes=32 * 1024 * 1024,
        ),
        cost_estimate=pl.CostEstimate(
            flops=flops, transcendentals=0, bytes_accessed=bytes_accessed),
    )(*operands)

    # Single cross-lane collapse + mean normalization on a tiny (8,128) array.
    return (jnp.sum(partials) / n).astype(out_dtype)


if __name__ == "__main__":
    key = jax.random.PRNGKey(0)
    k1, k2, k3, k4 = jax.random.split(key, 4)

    # NCHW inputs, mask over (N, C) that gets unsqueezed to (N, C, 1, 1).
    x = jax.random.normal(k1, (2, 4, 16, 16), dtype=jnp.float32)
    t = jax.random.normal(k2, (2, 4, 16, 16), dtype=jnp.float32)
    mask = (jax.random.uniform(k3, (2, 4)) > 0.5).astype(jnp.float32)

    # Masked case (compact per-row mask path: group size 16*16=256 is lane-aligned).
    loss_masked = masked_mse_loss(x, t, mask)
    jax.block_until_ready(loss_masked)

    # Unmasked case.
    loss_plain = masked_mse_loss(x, t)
    jax.block_until_ready(loss_plain)

    # Full-rank mask -> fallback full-mask stream path.
    mask_full = (jax.random.uniform(k4, (2, 4, 16, 16)) > 0.5).astype(jnp.float32)
    loss_fb = masked_mse_loss(x, t, mask_full)
    jax.block_until_ready(loss_fb)

    # Element count not a multiple of 128 -> small lane-pad path.
    x_odd = jax.random.normal(k1, (3, 5, 7), dtype=jnp.float32)
    t_odd = jax.random.normal(k2, (3, 5, 7), dtype=jnp.float32)
    loss_odd = masked_mse_loss(x_odd, t_odd)
    jax.block_until_ready(loss_odd)

    # Sanity checks against plain-JAX references.
    m_b = jnp.broadcast_to(mask[..., None, None], x.shape)
    ref_masked = jnp.mean((x * m_b - t * m_b) ** 2)
    ref_plain = jnp.mean((x - t) ** 2)
    ref_fb = jnp.mean((x * mask_full - t * mask_full) ** 2)
    ref_odd = jnp.mean((x_odd - t_odd) ** 2)

    assert jnp.allclose(loss_masked, ref_masked, rtol=1e-5, atol=1e-6)
    assert jnp.allclose(loss_plain, ref_plain, rtol=1e-5, atol=1e-6)
    assert jnp.allclose(loss_fb, ref_fb, rtol=1e-5, atol=1e-6)
    assert jnp.allclose(loss_odd, ref_odd, rtol=1e-5, atol=1e-6)

    print("KERNEL_OK")
</pallas_src>

<mosaic_0001>
module attributes {stable_mosaic.version = 11 : i64} {
  func.func @kernel(%arg0: i32, %arg1: memref<16x128xf32, #tpu.memory_space<vmem>>, %arg2: memref<16x128xf32, #tpu.memory_space<vmem>>, %arg3: memref<16x1xf32, #tpu.memory_space<vmem>>, %arg4: memref<8x128xf32, #tpu.memory_space<vmem>>) attributes {dimension_semantics = [#tpu.dimension_semantics<arbitrary>], iteration_bounds = array<i64: 1>, scalar_prefetch = 0 : i64, scratch_operands = 0 : i64, tpu.core_type = #tpu.core_type<tc>, window_params = [{transform_indices = @transform_0, window_bounds = array<i64: 16, 128>}, {transform_indices = @transform_1, window_bounds = array<i64: 16, 128>}, {transform_indices = @transform_2, window_bounds = array<i64: 16, 1>}, {pipeline_mode = #tpu.pipeline_mode<synchronous>, transform_indices = @transform_3, window_bounds = array<i64: 8, 128>}]} {
    %c0_i32 = arith.constant 0 : i32
    %0 = arith.cmpi eq, %arg0, %c0_i32 : i32
    %1 = arith.extui %0 : i1 to i32
    %c0_i32_0 = arith.constant 0 : i32
    %2 = arith.cmpi ne, %1, %c0_i32_0 : i32
    scf.if %2 {
      %cst_10 = arith.constant 0.000000e+00 : f32
      %15 = vector.broadcast %cst_10 : f32 to vector<8x128xf32>
      %c0_11 = arith.constant 0 : index
      %c0_12 = arith.constant 0 : index
      %16 = vector.load %arg4[%c0_11, %c0_12] : memref<8x128xf32, #tpu.memory_space<vmem>>, vector<8x128xf32>
      tpu.vector_store %arg4[%c0_11, %c0_12], %15 {strides = array<i32>} : memref<8x128xf32, #tpu.memory_space<vmem>>, vector<8x128xf32>,
    } else {
    }
    %c0 = arith.constant 0 : index
    %c0_1 = arith.constant 0 : index
    %3 = vector.load %arg1[%c0, %c0_1] : memref<16x128xf32, #tpu.memory_space<vmem>>, vector<16x128xf32>
    %c0_2 = arith.constant 0 : index
    %c0_3 = arith.constant 0 : index
    %4 = vector.load %arg2[%c0_2, %c0_3] : memref<16x128xf32, #tpu.memory_space<vmem>>, vector<16x128xf32>
    %5 = arith.subf %3, %4 : vector<16x128xf32>
    %c0_4 = arith.constant 0 : index
    %c0_5 = arith.constant 0 : index
    %6 = vector.load %arg3[%c0_4, %c0_5] : memref<16x1xf32, #tpu.memory_space<vmem>>, vector<16x1xf32>
    %7 = vector.broadcast %6 : vector<16x1xf32> to vector<16x128xf32>
    %8 = arith.mulf %5, %7 : vector<16x128xf32>
    %9 = arith.mulf %8, %8 : vector<16x128xf32>
    %c0_6 = arith.constant 0 : index
    %c0_7 = arith.constant 0 : index
    %10 = vector.load %arg4[%c0_6, %c0_7] : memref<8x128xf32, #tpu.memory_space<vmem>>, vector<8x128xf32>
    %11 = vector.shape_cast %9 : vector<16x128xf32> to vector<2x8x128xf32>
    %cst = arith.constant dense<0.000000e+00> : vector<8x128xf32>
    %12 = vector.multi_reduction <add>, %11, %cst [0] : vector<2x8x128xf32> to vector<8x128xf32>
    %13 = arith.addf %10, %12 : vector<8x128xf32>
    %c0_8 = arith.constant 0 : index
    %c0_9 = arith.constant 0 : index
    %14 = vector.load %arg4[%c0_8, %c0_9] : memref<8x128xf32, #tpu.memory_space<vmem>>, vector<8x128xf32>
    tpu.vector_store %arg4[%c0_8, %c0_9], %13 {strides = array<i32>} : memref<8x128xf32, #tpu.memory_space<vmem>>, vector<8x128xf32>,
    return
  }
  func.func @transform_0(%arg0: i32) -> (i32, i32) {
    %c0_i32 = arith.constant 0 : i32
    %c0_i32_0 = arith.constant 0 : i32
    return %arg0, %c0_i32 : i32, i32
  }
  func.func @transform_1(%arg0: i32) -> (i32, i32) {
    %c0_i32 = arith.constant 0 : i32
    %c0_i32_0 = arith.constant 0 : i32
    return %arg0, %c0_i32 : i32, i32
  }
  func.func @transform_2(%arg0: i32) -> (i32, i32) {
    %c0_i32 = arith.constant 0 : i32
    %c0_i32_0 = arith.constant 0 : i32
    return %arg0, %c0_i32 : i32, i32
  }
  func.func @transform_3(%arg0: i32) -> (i32, i32) {
    %c0_i32 = arith.constant 0 : i32
    %c0_i32_0 = arith.constant 0 : i32
    %c0_i32_1 = arith.constant 0 : i32
    return %c0_i32, %c0_i32_0 : i32, i32
  }
}

</mosaic_0001>

<bundles_post_ra>
// kernel: tpu_custom_call.1
= control target key start
LH: loop header
LB: loop body
LE: loop exit
PB: predicated region body
PF: predicated region fallthrough
CT: control target
= control target key end

     0   :  { %8 = vsyncpa [#allocation3], 0  ;;  %s181_s0 = inlined_call_operand.vmem [shape: f32[16,128], index: 0, kind: input, shape index: {}]   ;;  %s182_s1 = inlined_call_operand.hbm [shape: f32[16,128], index: 1, kind: input, shape index: {}]   ;;  %s183_s2 = inlined_call_operand.vmem [shape: f32[16,1], index: 2, kind: input, shape index: {}]   ;;  %s184_s3 = inlined_call_operand.hbm [shape: f32[8,128], index: 3, kind: output, shape index: {}]  }
   0x1   :  { %9 = vsyncpa [#allocation4], 0  ;;  %s16_s14 = sshll.u32 %s182_s1, 4  ;;  %s138_s15 = smov [#allocation2]   ;;  %s17_s14 = int_to_ptr.hbm [resolvable:$true] %s16_s14 }
   0x2   :  { %s18_s16 = sshll.u32 %s138_s15, 4  ;;  %s139_s17 = smov 128   ;;  %s19_s16 = int_to_ptr.vmem [resolvable:$true] %s18_s16 }
   0x3   :  { %s140_s18 = smov 8  }
   0x4   :  { %24 = dma.hbm_to_vmem [thread:$0]  %s17_s14, 256, %s19_s16, [#allocation3], %s139_s17, %s139_s17, %s140_s18  }
   0x5   :  { %134 = dma.done.wait [#allocation3], 256  }
   0x6   :  { %135 = vsyncadd [#allocation3], 4294967040  ;;  %v141_v0 = vmov 0   ;;  %v42_v1 = vld [vmem:[%s183_s2] sm:$0xff]  ;;  %v43_v2 = vld [vmem:[%s183_s2 + $0x8] sm:$0xff]  ;;  %s142_s2 = smov [#allocation5]  }
   0x7   :  { %85 = vset.pattern.permute.xlu0 %v141_v0  ;;  %v36_v4 = vld [vmem:[%s181_s0] sm:$0xff]  ;;  %v37_v6 = vld [vmem:[%s181_s0 + $0x8] sm:$0xff]  ;;  %s67_s26 = sshll.u32 %s142_s2, 4  ;;  %s69_s29 = sshll.u32 %s184_s3, 4  ;;  %s68_s26 = int_to_ptr.vmem [resolvable:$true] %s67_s26  ;;  %s70_s29 = int_to_ptr.hbm [resolvable:$true] %s69_s29 }
   0x8   :  { %46 = vperm.xlu0 %85, %v42_v1   ;;  %v38_v5 = vld [vmem:[#allocation2] sm:$0xff]  ;;  %v39_v7 = vld [vmem:[#allocation2 + $0x8] sm:$0xff] }
   0x9   :  { %v40_v8 = vsub.f32 %v36_v4, %v38_v5  ;;  %v41_v9 = vsub.f32 %v37_v6, %v39_v7 }
  0x10   :  { %51 = vperm.xlu0 %85, %v43_v2  }
  0x7a   :  { %v47_v3 = vpop.permute.xlu0 %46 }
  0x7b   :  { %v54_v10 = vmul.f32 %v47_v3, %v40_v8 }
  0x7d   :  { %v56_v13 = vmul.f32 %v54_v10, %v54_v10 }
  0x82   :  { %v52_v11 = vpop.permute.xlu0 %51 }
  0x83   :  { %v55_v12 = vmul.f32 %v52_v11, %v41_v9 }
  0x85   :  { %v57_v14 = vmul.f32 %v55_v12, %v55_v12 }
  0x87   :  { %v59_v15 = vadd.f32 %v57_v14, %v56_v13 }
  0x89   :  { %61 = vst [vmem:[#allocation5] sm:$0xff] %v59_v15 }
  0x8a   :  { %72 = dma.vmem_to_hbm [thread:$0]  %s68_s26, 128, %s70_s29, [#allocation4]  }
  0x8b   :  { %136 = dma.done.wait [#allocation4], 128  }
  0x8c   :  { %137 = vsyncadd [#allocation4], 4294967168 }
  0x8d   :  { %77 = vsyncpa [#allocation3], 1 }
  0x8e   :  { %78 = vsyncpa [#allocation4], 1 }

</bundles_post_ra>
